<compile_context>
chip_gen: v5e
topology: v5e:2x2
jax: 0.10.0
libtpu: 0.0.40
codegen_flags: <defaults>
</compile_context>

<pallas_src>
import jax
import jax.numpy as jnp
from jax.experimental import pallas as pl
from jax.experimental.pallas import tpu as pltpu


def upsample_conv1x1_kernel(dup_ref, x_ref, w_ref, b_ref, o_ref):
    # dup_ref: (K, Wd)              one-hot duplication matrix (VMEM, DMA'd once)
    # x_ref:   (Nb, C, TG, K)       folded NCHW input block
    # w_ref:   (Cout*C,)            1-D SMEM weight table, w[co*C + c]
    # b_ref:   (Cout,)              1-D SMEM bias
    # o_ref:   (Nb, Cout, TG, Wout) folded NCHW output block
    Nb, C, TG, K = x_ref.shape
    Cout = o_ref.shape[1]
    Wout = o_ref.shape[-1]
    Wd = dup_ref.shape[-1]
    f32 = jnp.float32

    dup = dup_ref[...]  # hoisted: loaded once per grid step (grid-invariant data)

    for nb in range(Nb):
        for co in range(Cout):
            # --- 1x1 conv at *input* resolution (commutes exactly with nearest x2) ---
            # TODO(synk): for large C switch this unrolled scalar-FMA loop to an
            #             MXU contraction with VMEM weights.
            y = x_ref[nb, 0].astype(f32) * w_ref[co * C + 0]
            for c in range(1, C):
                y = y + x_ref[nb, c].astype(f32) * w_ref[co * C + c]
            y = y + b_ref[co]                                   # (TG, K), f32

            # --- nearest-neighbor duplication via one small one-hot matmul ---
            # One-hot copy; HIGHEST precision keeps it f32-exact on the MXU.
            up = jnp.dot(y, dup, precision=jax.lax.Precision.HIGHEST,
                         preferred_element_type=f32).astype(o_ref.dtype)

            if Wd == Wout:
                # folded small-W path: matmul already produced the full lane-dense
                # (row+column duplicated) output row-group -> one dense store.
                o_ref[nb, co] = up
            else:
                # r == 1 path: `up` is the column-duplicated row (TG, 2W); the two
                # contiguous halves of the 4W-wide paired-rows layout are the even
                # and odd output rows -> two dense stores, O(elements), no MXU.
                o_ref[nb, co, :, :Wd] = up
                o_ref[nb, co, :, Wd:] = up


def _vmem_budget():
    """(block budget bytes, vmem_limit_bytes) -- generation dependent with margin."""
    cap = 64 * 1024 * 1024                       # conservative default (v7x per-core)
    try:
        info = pltpu.get_tpu_info()
        cap = int(getattr(info, "vmem_capacity_bytes", cap)) or cap
    except Exception:
        pass
    # ~45% of VMEM for the pipelined in/out blocks (leaves room for the dup
    # matrix, f32 temporaries and compiler scratch -- review concern), ~75% as
    # the scoped limit, clamped to stay safe on every generation.
    budget = max(4 * 1024 * 1024, min(int(cap * 0.45), 56 * 1024 * 1024))
    limit = max(32 * 1024 * 1024, min(int(cap * 0.75), 96 * 1024 * 1024))
    return budget, limit


def _pick_block_rows(HG, row_bytes, budget):
    """Largest legal row-block ((8,128)-rule compliant) whose double-buffered
    in+out blocks fit `budget`."""
    if HG * row_bytes * 2 <= budget:
        return HG                                # whole (folded) image height per step
    if HG % 8 != 0:
        return HG                                # full-extent block is the only legal choice
    best = 8
    for tg in range(8, HG, 8):
        if HG % tg == 0 and tg * row_bytes * 2 <= budget:
            best = tg
    return best


def _pick_batch_block(N, n_row_blocks, img_block_bytes, budget):
    """Images per grid step: amortize per-step overhead on small tensors but keep
    >=2 grid steps when there is >=2 blocks of work (both v7x TCs busy)."""
    best = 1
    total_work = N * n_row_blocks
    for cand in range(1, N + 1):
        if N % cand != 0 or cand * img_block_bytes > budget:
            continue
        work = (N // cand) * n_row_blocks
        if work >= 2 or total_work < 2:
            best = cand
    return best


def upsampling_forward(x, weight, bias, *, block_rows=None, batch_block=None):
    """x: (N, C, H, W); weight: (C//2, C, 1, 1); bias: (C//2,) -> (N, C//2, 2H, 2W)."""
    N, C, H, W = x.shape
    Cout = weight.shape[0]

    # ---- fold factor: pack r input rows into the lane dim so the output's last
    #      dim (4*r*W) is lane-dense (>=128) even for small-W images. ----------
    r = 1
    while 4 * r * W < 128 and H % (2 * r) == 0:
        r *= 2
    K = r * W                    # folded input width  (matmul contraction size)
    HG = H // r                  # folded row-group count

    # ---- grid-invariant one-hot duplication matrix (built once, DMA'd once) --
    if r == 1:
        # columns only: out[:, 2j+dj] = in[:, j]; rows are duplicated by the two
        # contiguous half-stores in the kernel.
        a = jnp.arange(W)
        b = jnp.arange(2 * W)
        dup = (b[None, :] // 2 == a[:, None]).astype(jnp.float32)      # (W, 2W)
    else:
        # rows + columns inside one folded row-group:
        #   in  flat a = k*W + j
        #   out flat b = (2k+dk)*2W + 2j+dj
        a = jnp.arange(K)
        b = jnp.arange(4 * K)
        dup = ((a[:, None] // W == (b[None, :] // (2 * W)) // 2)
               & (a[:, None] % W == (b[None, :] % (2 * W)) // 2)
               ).astype(jnp.float32)                                    # (K, 4K)
    Wout = 4 * K                 # folded output width: [row 2h | row 2h+1] per group

    # ---- tiling --------------------------------------------------------------
    budget, vmem_limit = _vmem_budget()
    itemsize = jnp.dtype(x.dtype).itemsize
    row_bytes = C * K * itemsize + Cout * Wout * itemsize   # per folded row, per image
    block_budget = max(2 * row_bytes, budget - 2 * dup.size * 4)

    TG = block_rows if block_rows is not None else _pick_block_rows(HG, row_bytes, block_budget)
    assert HG % TG == 0, (HG, TG)
    Nb = (batch_block if batch_block is not None
          else _pick_batch_block(N, HG // TG, TG * row_bytes * 2, block_budget))
    assert N % Nb == 0, (N, Nb)

    w_flat = weight.reshape(Cout * C).astype(jnp.float32)    # 1-D SMEM scalar table
    b_vec = bias.reshape(Cout).astype(jnp.float32)           # 1-D SMEM scalar table

    out_folded = pl.pallas_call(
        upsample_conv1x1_kernel,
        out_shape=jax.ShapeDtypeStruct((N, Cout, HG, Wout), x.dtype),
        grid=(N // Nb, HG // TG),
        in_specs=[
            # constant index_map -> the dup matrix is DMA'd once, never re-fetched
            pl.BlockSpec(dup.shape, lambda n, h: (0, 0)),
            pl.BlockSpec((Nb, C, TG, K), lambda n, h: (n, 0, h, 0)),
            pl.BlockSpec(memory_space=pltpu.MemorySpace.SMEM),   # weights
            pl.BlockSpec(memory_space=pltpu.MemorySpace.SMEM),   # bias
        ],
        out_specs=pl.BlockSpec((Nb, Cout, TG, Wout), lambda n, h: (n, 0, h, 0)),
        compiler_params=pltpu.CompilerParams(
            dimension_semantics=("parallel", "parallel"),   # independent -> megacore
            vmem_limit_bytes=vmem_limit,
        ),
    )(dup, x.reshape(N, C, HG, K), w_flat, b_vec)

    # Free (contiguous) view back to NCHW: (HG, 4*r*W) == (HG, 2r, 2W) == (2H, 2W).
    return out_folded.reshape(N, Cout, 2 * H, 2 * W)


def reference_forward(x_nchw, weight, bias):
    """Pure-JAX reference: nearest x2 upsample then 1x1 conv (NCHW), true f32."""
    up = jnp.repeat(jnp.repeat(x_nchw, 2, axis=2), 2, axis=3)            # (N, C, 2H, 2W)
    w2d = weight.reshape(weight.shape[0], weight.shape[1])               # (Cout, C)
    y = (up[:, None, :, :, :] * w2d[None, :, :, None, None]).sum(axis=2)
    return y + bias[None, :, None, None]


if __name__ == "__main__":
    def run_case(N, C, H, W, **kw):
        Cout = C // 2
        key = jax.random.PRNGKey(0)
        kx, kw_, kb = jax.random.split(key, 3)
        x = jax.random.normal(kx, (N, C, H, W), dtype=jnp.float32)
        bound = 1.0 / (C ** 0.5)          # Conv2d default-init bound (deterministic params)
        weight = jax.random.uniform(kw_, (Cout, C, 1, 1), jnp.float32, -bound, bound)
        bias = jax.random.uniform(kb, (Cout,), jnp.float32, -bound, bound)

        out = jax.block_until_ready(upsampling_forward(x, weight, bias, **kw))
        ref = jax.block_until_ready(reference_forward(x, weight, bias))
        assert out.shape == (N, Cout, 2 * H, 2 * W), out.shape
        err = float(jnp.abs(out - ref).max())
        assert jnp.allclose(out, ref, atol=1e-5, rtol=1e-5), err

    # small-W case (the module's toy shape): folded, lane-dense path (r = 2)
    run_case(2, 4, 16, 16)
    # W >= 32 case: column-dup matmul + paired-row half-stores (r = 1)
    run_case(2, 4, 8, 32)
    # r = 1 path with an explicitly H-tiled grid and multi-image blocks
    run_case(2, 4, 16, 32, block_rows=8)

    print("KERNEL_OK")
</pallas_src>

<mosaic_0001>
module attributes {stable_mosaic.version = 11 : i64} {
  func.func @upsample_conv1x1_kernel(%arg0: i32, %arg1: i32, %arg2: memref<32x128xf32, #tpu.memory_space<vmem>>, %arg3: memref<1x4x8x32xf32, #tpu.memory_space<vmem>>, %arg4: memref<8xf32, #tpu.memory_space<smem>>, %arg5: memref<2xf32, #tpu.memory_space<smem>>, %arg6: memref<1x2x8x128xf32, #tpu.memory_space<vmem>>) attributes {dimension_semantics = [#tpu.dimension_semantics<parallel>, #tpu.dimension_semantics<parallel>], iteration_bounds = array<i64: 2, 1>, scalar_prefetch = 0 : i64, scratch_operands = 0 : i64, tpu.core_type = #tpu.core_type<tc>, window_params = [{pipeline_mode = #tpu.pipeline_mode<synchronous>, transform_indices = @transform_0, window_bounds = array<i64: 32, 128>}, {transform_indices = @transform_1, window_bounds = array<i64: 1, 4, 8, 32>}, {transform_indices = @transform_2, window_bounds = array<i64: 8>}, {transform_indices = @transform_3, window_bounds = array<i64: 2>}, {transform_indices = @transform_4, window_bounds = array<i64: 1, 2, 8, 128>}]} {
    %c0 = arith.constant 0 : index
    %c0_0 = arith.constant 0 : index
    %0 = vector.load %arg2[%c0, %c0_0] : memref<32x128xf32, #tpu.memory_space<vmem>>, vector<32x128xf32>
    %c0_1 = arith.constant 0 : index
    %c0_2 = arith.constant 0 : index
    %c0_3 = arith.constant 0 : index
    %c0_4 = arith.constant 0 : index
    %1 = vector.load %arg3[%c0_1, %c0_2, %c0_3, %c0_4] : memref<1x4x8x32xf32, #tpu.memory_space<vmem>>, vector<1x1x8x32xf32>
    %2 = vector.shape_cast %1 : vector<1x1x8x32xf32> to vector<8x32xf32>
    %c0_5 = arith.constant 0 : index
    %3 = memref.load %arg4[%c0_5] : memref<8xf32, #tpu.memory_space<smem>>
    %4 = vector.broadcast %3 : f32 to vector<8x32xf32>
    %5 = arith.mulf %2, %4 : vector<8x32xf32>
    %c0_6 = arith.constant 0 : index
    %c1 = arith.constant 1 : index
    %c0_7 = arith.constant 0 : index
    %c0_8 = arith.constant 0 : index
    %6 = vector.load %arg3[%c0_6, %c1, %c0_7, %c0_8] : memref<1x4x8x32xf32, #tpu.memory_space<vmem>>, vector<1x1x8x32xf32>
    %7 = vector.shape_cast %6 : vector<1x1x8x32xf32> to vector<8x32xf32>
    %c1_9 = arith.constant 1 : index
    %8 = memref.load %arg4[%c1_9] : memref<8xf32, #tpu.memory_space<smem>>
    %9 = vector.broadcast %8 : f32 to vector<8x32xf32>
    %10 = arith.mulf %7, %9 : vector<8x32xf32>
    %11 = arith.addf %5, %10 : vector<8x32xf32>
    %c0_10 = arith.constant 0 : index
    %c2 = arith.constant 2 : index
    %c0_11 = arith.constant 0 : index
    %c0_12 = arith.constant 0 : index
    %12 = vector.load %arg3[%c0_10, %c2, %c0_11, %c0_12] : memref<1x4x8x32xf32, #tpu.memory_space<vmem>>, vector<1x1x8x32xf32>
    %13 = vector.shape_cast %12 : vector<1x1x8x32xf32> to vector<8x32xf32>
    %c2_13 = arith.constant 2 : index
    %14 = memref.load %arg4[%c2_13] : memref<8xf32, #tpu.memory_space<smem>>
    %15 = vector.broadcast %14 : f32 to vector<8x32xf32>
    %16 = arith.mulf %13, %15 : vector<8x32xf32>
    %17 = arith.addf %11, %16 : vector<8x32xf32>
    %c0_14 = arith.constant 0 : index
    %c3 = arith.constant 3 : index
    %c0_15 = arith.constant 0 : index
    %c0_16 = arith.constant 0 : index
    %18 = vector.load %arg3[%c0_14, %c3, %c0_15, %c0_16] : memref<1x4x8x32xf32, #tpu.memory_space<vmem>>, vector<1x1x8x32xf32>
    %19 = vector.shape_cast %18 : vector<1x1x8x32xf32> to vector<8x32xf32>
    %c3_17 = arith.constant 3 : index
    %20 = memref.load %arg4[%c3_17] : memref<8xf32, #tpu.memory_space<smem>>
    %21 = vector.broadcast %20 : f32 to vector<8x32xf32>
    %22 = arith.mulf %19, %21 : vector<8x32xf32>
    %23 = arith.addf %17, %22 : vector<8x32xf32>
    %c0_18 = arith.constant 0 : index
    %24 = memref.load %arg5[%c0_18] : memref<2xf32, #tpu.memory_space<smem>>
    %25 = vector.broadcast %24 : f32 to vector<8x32xf32>
    %26 = arith.addf %23, %25 : vector<8x32xf32>
    %cst = arith.constant dense<0.000000e+00> : vector<8x128xf32>
    %27 = tpu.matmul %26, %0, %cst {dimension_numbers = #tpu.dot_dimension_numbers<[1], [0], [0], [1], [0, 0, 1, 1], [], []>, precision = #tpu.contract_precision<fp32>} : vector<8x32xf32>, vector<32x128xf32>, vector<8x128xf32> -> vector<8x128xf32>
    %c0_19 = arith.constant 0 : index
    %c0_20 = arith.constant 0 : index
    %c0_21 = arith.constant 0 : index
    %c0_22 = arith.constant 0 : index
    %28 = vector.load %arg6[%c0_19, %c0_20, %c0_21, %c0_22] : memref<1x2x8x128xf32, #tpu.memory_space<vmem>>, vector<1x1x8x128xf32>
    %29 = vector.shape_cast %28 : vector<1x1x8x128xf32> to vector<8x128xf32>
    %30 = vector.shape_cast %27 : vector<8x128xf32> to vector<1x1x8x128xf32>
    tpu.vector_store %arg6[%c0_19, %c0_20, %c0_21, %c0_22], %30 {strides = array<i32>} : memref<1x2x8x128xf32, #tpu.memory_space<vmem>>, vector<1x1x8x128xf32>,
    %c0_23 = arith.constant 0 : index
    %c0_24 = arith.constant 0 : index
    %c0_25 = arith.constant 0 : index
    %c0_26 = arith.constant 0 : index
    %31 = vector.load %arg3[%c0_23, %c0_24, %c0_25, %c0_26] : memref<1x4x8x32xf32, #tpu.memory_space<vmem>>, vector<1x1x8x32xf32>
    %32 = vector.shape_cast %31 : vector<1x1x8x32xf32> to vector<8x32xf32>
    %c4 = arith.constant 4 : index
    %33 = memref.load %arg4[%c4] : memref<8xf32, #tpu.memory_space<smem>>
    %34 = vector.broadcast %33 : f32 to vector<8x32xf32>
    %35 = arith.mulf %32, %34 : vector<8x32xf32>
    %c0_27 = arith.constant 0 : index
    %c1_28 = arith.constant 1 : index
    %c0_29 = arith.constant 0 : index
    %c0_30 = arith.constant 0 : index
    %36 = vector.load %arg3[%c0_27, %c1_28, %c0_29, %c0_30] : memref<1x4x8x32xf32, #tpu.memory_space<vmem>>, vector<1x1x8x32xf32>
    %37 = vector.shape_cast %36 : vector<1x1x8x32xf32> to vector<8x32xf32>
    %c5 = arith.constant 5 : index
    %38 = memref.load %arg4[%c5] : memref<8xf32, #tpu.memory_space<smem>>
    %39 = vector.broadcast %38 : f32 to vector<8x32xf32>
    %40 = arith.mulf %37, %39 : vector<8x32xf32>
    %41 = arith.addf %35, %40 : vector<8x32xf32>
    %c0_31 = arith.constant 0 : index
    %c2_32 = arith.constant 2 : index
    %c0_33 = arith.constant 0 : index
    %c0_34 = arith.constant 0 : index
    %42 = vector.load %arg3[%c0_31, %c2_32, %c0_33, %c0_34] : memref<1x4x8x32xf32, #tpu.memory_space<vmem>>, vector<1x1x8x32xf32>
    %43 = vector.shape_cast %42 : vector<1x1x8x32xf32> to vector<8x32xf32>
    %c6 = arith.constant 6 : index
    %44 = memref.load %arg4[%c6] : memref<8xf32, #tpu.memory_space<smem>>
    %45 = vector.broadcast %44 : f32 to vector<8x32xf32>
    %46 = arith.mulf %43, %45 : vector<8x32xf32>
    %47 = arith.addf %41, %46 : vector<8x32xf32>
    %c0_35 = arith.constant 0 : index
    %c3_36 = arith.constant 3 : index
    %c0_37 = arith.constant 0 : index
    %c0_38 = arith.constant 0 : index
    %48 = vector.load %arg3[%c0_35, %c3_36, %c0_37, %c0_38] : memref<1x4x8x32xf32, #tpu.memory_space<vmem>>, vector<1x1x8x32xf32>
    %49 = vector.shape_cast %48 : vector<1x1x8x32xf32> to vector<8x32xf32>
    %c7 = arith.constant 7 : index
    %50 = memref.load %arg4[%c7] : memref<8xf32, #tpu.memory_space<smem>>
    %51 = vector.broadcast %50 : f32 to vector<8x32xf32>
    %52 = arith.mulf %49, %51 : vector<8x32xf32>
    %53 = arith.addf %47, %52 : vector<8x32xf32>
    %c1_39 = arith.constant 1 : index
    %54 = memref.load %arg5[%c1_39] : memref<2xf32, #tpu.memory_space<smem>>
    %55 = vector.broadcast %54 : f32 to vector<8x32xf32>
    %56 = arith.addf %53, %55 : vector<8x32xf32>
    %cst_40 = arith.constant dense<0.000000e+00> : vector<8x128xf32>
    %57 = tpu.matmul %56, %0, %cst_40 {dimension_numbers = #tpu.dot_dimension_numbers<[1], [0], [0], [1], [0, 0, 1, 1], [], []>, precision = #tpu.contract_precision<fp32>} : vector<8x32xf32>, vector<32x128xf32>, vector<8x128xf32> -> vector<8x128xf32>
    %c0_41 = arith.constant 0 : index
    %c1_42 = arith.constant 1 : index
    %c0_43 = arith.constant 0 : index
    %c0_44 = arith.constant 0 : index
    %58 = vector.load %arg6[%c0_41, %c1_42, %c0_43, %c0_44] : memref<1x2x8x128xf32, #tpu.memory_space<vmem>>, vector<1x1x8x128xf32>
    %59 = vector.shape_cast %58 : vector<1x1x8x128xf32> to vector<8x128xf32>
    %60 = vector.shape_cast %57 : vector<8x128xf32> to vector<1x1x8x128xf32>
    tpu.vector_store %arg6[%c0_41, %c1_42, %c0_43, %c0_44], %60 {strides = array<i32>} : memref<1x2x8x128xf32, #tpu.memory_space<vmem>>, vector<1x1x8x128xf32>,
    return
  }
  func.func @transform_0(%arg0: i32, %arg1: i32) -> (i32, i32) {
    %c0_i32 = arith.constant 0 : i32
    %c0_i32_0 = arith.constant 0 : i32
    %c0_i32_1 = arith.constant 0 : i32
    return %c0_i32, %c0_i32_0 : i32, i32
  }
  func.func @transform_1(%arg0: i32, %arg1: i32) -> (i32, i32, i32, i32) {
    %c0_i32 = arith.constant 0 : i32
    %c0_i32_0 = arith.constant 0 : i32
    %c0_i32_1 = arith.constant 0 : i32
    return %arg0, %c0_i32, %arg1, %c0_i32_0 : i32, i32, i32, i32
  }
  func.func @transform_2(%arg0: i32, %arg1: i32) -> i32 {
    %c0_i32 = arith.constant 0 : i32
    %c0_i32_0 = arith.constant 0 : i32
    return %c0_i32 : i32
  }
  func.func @transform_3(%arg0: i32, %arg1: i32) -> i32 {
    %c0_i32 = arith.constant 0 : i32
    %c0_i32_0 = arith.constant 0 : i32
    return %c0_i32 : i32
  }
  func.func @transform_4(%arg0: i32, %arg1: i32) -> (i32, i32, i32, i32) {
    %c0_i32 = arith.constant 0 : i32
    %c0_i32_0 = arith.constant 0 : i32
    %c0_i32_1 = arith.constant 0 : i32
    return %arg0, %c0_i32, %arg1, %c0_i32_0 : i32, i32, i32, i32
  }
}

</mosaic_0001>

<bundles_post_ra>
// kernel: tpu_custom_call.1
= control target key start
LH: loop header
LB: loop body
LE: loop exit
PB: predicated region body
PF: predicated region fallthrough
CT: control target
= control target key end

     0   :  { %s1489_s0 = inlined_call_operand.hbm [shape: f32[32,128], index: 0, kind: input, shape index: {}]   ;;  %s1490_s1 = inlined_call_operand.hbm [shape: f32[2,4,8,32], index: 1, kind: input, shape index: {}]   ;;  %s1491_s2 = inlined_call_operand.vmem [shape: f32[8], index: 2, kind: input, shape index: {}]   ;;  %s1492_s3 = inlined_call_operand.vmem [shape: f32[2], index: 3, kind: input, shape index: {}]   ;;  %s1493_s4 = inlined_call_operand.hbm [shape: f32[2,2,8,128], index: 4, kind: output, shape index: {}]  }
   0x1   :  { %1496 = sst [smem:[#allocation17_spill]] %s1489_s0 }
   0x2   :  { %1497 = sst [smem:[#allocation18_spill]] %s1491_s2 }
   0x3   :  { %9 = vsyncpa [#allocation3], 0 }
   0x4   :  { %10 = vsyncpa [#allocation7], 0 }
   0x5   :  { %12 = vsyncpa [#allocation7 + $0x1], 0 }
   0x6   :  { %13 = vsyncpa [#allocation5], 0 }
   0x7   :  { %14 = vsyncpa [#allocation10], 0 }
   0x8   :  { %15 = vsyncpa [#allocation4], 0 }
   0x9   :  { %17 = vsyncpa [#allocation4 + $0x1], 0  ;;  %s1199_s15 = smov 0   ;;  %s1201_s16 = smov 0  }
   0xa   :  { %s1203_s17 = smov 0   ;;  %s1205_s18 = smov 0  }
   0xb   :  { %s1207_s19 = smov 0   ;;  %s1209_s20 = smov 0  }
   0xc LB: > { %s846_s21 = sadd.s32 4294967295, %s1165_s20   ;;  %s847_s22 = sadd.s32 4294967294, %s1165_s20   ;;  %s1165_s20 = sphi %s1209_s20, %s23_s20   ;;  %s1161_s19 = sphi %s1207_s19, %s1513_s19   ;;  %s1157_s18 = sphi %s1205_s18, %s1512_s18   ;;  %s1153_s17 = sphi %s1203_s17, %s1511_s17   ;;  %s1149_s16 = sphi %s1201_s16, %s1510_s16   ;;  %s1145_s15 = sphi %s1199_s15, %s1509_s15  }
   0xd   : > { %p78_p0 = scmp.ne.s32.totalorder %s1149_s16, %s1145_s15  ;;  %p1233_p1 = scmp.eq.s32.totalorder %s846_s21, 0 }
   0xe   : > { %p1237_p2 = scmp.eq.s32.totalorder %s846_s21, 1  ;;  %p152_p3 = scmp.eq.s32.totalorder %s847_s22, 1 }
   0xf   : > { %p1243_p4 = por %p1233_p1, %p78_p0  ;;  %p848_p5 = scmp.ge.s32.totalorder %s1165_s20, 1 }
  0x10   : > { %p1248_p6 = por %p152_p3, %p78_p0  ;;  %p159_p7 = scmp.lt.s32.totalorder %s1165_s20, 3 }
  0x11   : > { %s1502_s0 = sld [smem:[#allocation17_spill]]  ;;  %s1167_s5 = smov [#allocation2]  }
  0x12   : > { %p1256_p8 = pnand %p848_p5, %p159_p7  ;;  %s172_s6 = sshll.u32 %s1167_s5, 4  ;;  %s173_s6 = int_to_ptr.vmem [resolvable:$true] %s172_s6 }
  0x13   : > { %p852_p11 = scmp.ge.s32.totalorder %s1165_s20, 2  ;;  %s1504_s2 = sld [smem:[#allocation18_spill]] }
  0x14   : > { %p900_p9 = pneg %p1256_p8  ;;  %s1494_s10 = smov 128  }
  0x15   : > { %s1495_s11 = smov 8   ;;  %s1170_s12 = smov [#allocation8]  }
  0x16   : > { %p901_p10 = pnand %p900_p9, %p1233_p1  ;;  %s195_s21 = sshll.u32 %s1492_s3, 4  ;;  %s196_s21 = int_to_ptr.vmem [resolvable:$true] %s195_s21 }
  0x17   : > { %s170_s29 = sshll.u32 %s1502_s0, 4  ;;  %s1171_s22 = smov [#allocation9]   ;;  %s171_s29 = int_to_ptr.hbm [resolvable:$true] %s170_s29 }
  0x18   : > { %903 = dma.hbm_to_vmem [thread:$0]  (!%p901_p10), %s171_s29, 512, %s173_s6, [#allocation3], %s1494_s10, %s1494_s10, %s1495_s11  }
  0x19   : > { %s185_s9 = sshll.u32 %s1504_s2, 4  ;;  %s65_s27 = sadd.s32 1, %s1153_s17  ;;  %s186_s9 = int_to_ptr.vmem [resolvable:$true] %s185_s9 }
  0x1a   : > { %906 = dma.vmem_to_smem (!%p901_p10), %s186_s9, 16, %s1170_s12, [#allocation5]  }
  0x1b   : > { %909 = dma.vmem_to_smem (!%p901_p10), %s196_s21, 16, %s1171_s22, [#allocation10]  }
  0x1c   : > { %s35_s28 = sadd.s32 1, %s1161_s19  ;;  %p72_p12 = scmp.ne.s32.totalorder %s1153_s17, %s1149_s16 }
  0x1d   : > { %p37_p13 = scmp.ge.s32.totalorder %s35_s28, 2  ;;  %p73_p0 = scmp.eq.s32.totalorder %s1165_s20, 0 }
  0x1e   : > { %p1281_p3 = por %p1237_p2, %p72_p12  ;;  %p921_p5 = scmp.lt.s32.totalorder %s1165_s20, 2 }
  0x1f   : > { %s1515_s28 = smov (%p37_p13, %s35_s28), 0  ;;  %p1288_p7 = por %p73_p0, %p72_p12 }
  0x20   : > { %s206_s6 = sand.u32 1, %s1153_s17   ;;  %s60_s7 = ssub.s32 %s1161_s19, %s1515_s28 }
  0x21   : > { %p63_p9 = scmp.eq.s32.totalorder %s60_s7, 0  ;;  %s853_s8 = sshll.u32 %s206_s6, 5 }
  0x22   : > { %s882_s9 = sshll.u32 %s1161_s19, 5  ;;  %s210_s21 = scalar_lea.vmem [#allocation6], %s853_s8 }
  0x23   : > { %s1297_s24 = scalar_select %p63_p9, %s1153_s17, %s65_s27  }
  0x24   : > { %s216_s14 = scalar_lea.hbm %s1490_s1, %s882_s9  ;;  %s219_s22 = sshll.u32 %s210_s21, 4  ;;  %s220_s22 = int_to_ptr.vmem [resolvable:$true] %s219_s22 }
  0x25   : > { %s217_s10 = sshll.u32 %s216_s14, 4  ;;  %p911_p2 = pnand %p921_p5, %p1288_p7  ;;  %s218_s10 = int_to_ptr.hbm [resolvable:$true] %s217_s10 }
  0x26   : > { %s207_s11 = scalar_lea.sflag [#allocation7], %s206_s6  ;;  %s1507_s0 = smov 8  }
  0x27   : > { %s1508_s2 = smov 128   ;;  %231 = sbr.rel (%p1256_p8) target bundleno = 239 (0xef), region = 36 }
  0x28   : > { %913 = dma.hbm_to_vmem [thread:$0]  (!%p911_p2), %s218_s10, 512, %s220_s22, %s207_s11, %s1508_s2, %s1508_s2, %s1507_s0  }
  0x2c   : > { %1124 = dma.done.wait (%p1233_p1), [#allocation3], 512  }
  0x2d   : > { %1126 = vsyncadd (%p1233_p1), [#allocation3], 4294966784  ;;  %s1316_s27 = sand.u32 1, %s1149_s16  }
  0x2e   : > { %s858_s5 = sshll.u32 %s1316_s27, 5  ;;  %s239_s6 = scalar_lea.sflag [#allocation7], %s1316_s27 }
  0x2f   : > { %s1320_s7 = scalar_lea.vmem [#allocation6], %s858_s5 }
  0x30   : > { %1128 = dma.done.wait (%p1243_p4), %s239_s6, 512  }
  0x31   : > { %1130 = vsyncadd (%p1243_p4), %s239_s6, 4294966784 }
  0x32   : > { %1132 = dma.done.wait (%p1233_p1), [#allocation5], 16  }
  0x33   : > { %1134 = vsyncadd (%p1233_p1), [#allocation5], 4294967280 }
  0x34   : > { %1136 = dma.done.wait (%p1233_p1), [#allocation10], 16  }
  0x35   : > { %1138 = vsyncadd (%p1233_p1), [#allocation10], 4294967280 }
  0x36   : > { %258 = sfence }
  0x37   : > { %v282_v0 = vld [vmem:[#allocation2 + $0x18] sm:$0xff]  ;;  %v281_v1 = vld [vmem:[#allocation2 + $0x10] sm:$0xff]  ;;  %v280_v2 = vld [vmem:[#allocation2 + $0x8] sm:$0xff]  ;;  %s1334_s0 = sld [smem:[#allocation8]]  ;;  %vm308_vm0 = vcmask 261120   ;;  %s861_s13 = sshll.u32 %s1316_s27, 4 }
  0x38   : > { %v1336_v3 = vand.u32 4294901760, %v282_v0  ;;  %v1338_v4 = vand.u32 4294901760, %v281_v1  ;;  %v1340_v5 = vand.u32 4294901760, %v280_v2  ;;  %v279_v6 = vld [vmem:[#allocation2] sm:$0xff]  ;;  %s1344_s2 = sld [smem:[#allocation8 + $0x1]]  ;;  %v862_v17 = vld [vmem:[%s1320_s7 + $0x8] sm:$0xff] }
  0x39   : > { %v1342_v7 = vand.u32 4294901760, %v279_v6  ;;  %s1357_s23 = sld [smem:[#allocation8 + $0x2]]  ;;  %v283_v12 = vld [vmem:[%s1320_s7] sm:$0xff]  ;;  %v864_v22 = vld [vmem:[%s1320_s7 + $0x10] sm:$0xff]  ;;  %v866_v24 = vld [vmem:[%s1320_s7 + $0x18] sm:$0xff]  ;;  %s278_s14 = scalar_lea.vmem [#allocation11], %s861_s13 }
  0x3a   : > { %v1347_v8 = vsub.f32 %v282_v0, %v1336_v3  ;;  %v1350_v9 = vsub.f32 %v281_v1, %v1338_v4  ;;  %425 = vmatpush.msra.mxu3 %v1336_v3  ;;  %325 = vmatpush.msra.mxu0 %v1336_v3  ;;  %v1355_v10 = vsub.f32 %v280_v2, %v1340_v5  ;;  %s1363_s25 = sld [smem:[#allocation8 + $0x3]]  ;;  %s883_s21 = sshll.u32 %s1157_s18, 4 }
  0x3b   : > { %v1360_v11 = vsub.f32 %v279_v6, %v1342_v7  ;;  %s1373_s30 = sld [smem:[#allocation9]]  ;;  %s723_s6 = scalar_lea.hbm %s1493_s4, %s883_s21 }
  0x3c   : > { %396 = vmatpush.msra.mxu2 %v1347_v8  ;;  %v1367_v13 = vand.u32 4294901760, %v1347_v8  ;;  %427 = vmatpush.msra.mxu3 %v1338_v4  ;;  %v1371_v14 = vand.u32 4294901760, %v1350_v9  ;;  %v1376_v15 = vand.u32 4294901760, %v1355_v10  ;;  %s1381_s10 = sld [smem:[#allocation8 + $0x4]]  ;;  %s724_s7 = sshll.u32 %s278_s14, 4  ;;  %s725_s7 = int_to_ptr.vmem [resolvable:$true] %s724_s7 }
  0x3d   : > { %327 = vmatpush.msra.mxu0 %v1338_v4  ;;  %v285_v16 = vstv %s1334_s0  ;;  %v1384_v18 = vand.u32 4294901760, %v1360_v11  ;;  %s1393_s11 = sld [smem:[#allocation8 + $0x5]]  ;;  %s726_s0 = sshll.u32 %s723_s6, 4  ;;  %s727_s0 = int_to_ptr.hbm [resolvable:$true] %s726_s0 }
  0x3e   : > { %399 = vmatpush.msra.mxu2 %v1350_v9  ;;  %v356_v19 = vsub.f32 %v1347_v8, %v1367_v13  ;;  %v362_v20 = vsub.f32 %v1350_v9, %v1371_v14  ;;  %429 = vmatpush.msra.mxu3 %v1340_v5  ;;  %v286_v21 = vmul.f32 %v285_v16, %v283_v12  ;;  %v290_v23 = vstv %s1344_s2  ;;  %s1397_s8 = sld [smem:[#allocation8 + $0x6]]  ;;  %s711_s18 = scalar_lea.sflag [#allocation4], %s1316_s27 }
  0x3f   : > { %329 = vmatpush.msra.mxu0 %v1340_v5  ;;  %v368_v25 = vsub.f32 %v1355_v10, %v1376_v15  ;;  %v374_v26 = vsub.f32 %v1360_v11, %v1384_v18  ;;  %v291_v29 = vmul.f32 %v862_v17, %v290_v23  ;;  %v296_v30 = vstv %s1357_s23  ;;  %s1406_s9 = sld [smem:[#allocation8 + $0x7]]  ;;  %s1085_s2 = sshra.s32 %s727_s0, 4  ;;  %s1086_s2 = int_to_ptr.hbm [resolvable:$true] %s1085_s2 }
  0x40   : > { %v357_v27 = vand.u32 4294901760, %v356_v19  ;;  %402 = vmatpush.msra.mxu2 %v1355_v10  ;;  %v363_v28 = vand.u32 4294901760, %v362_v20  ;;  %431 = vmatpush.msra.mxu3 %v1342_v7  ;;  %v297_v31 = vmul.f32 %v864_v22, %v296_v30  ;;  %v302_v32 = vstv %s1363_s25  ;;  %s1412_s12 = sld [smem:[#allocation9 + $0x1]]  ;;  %s1087_s23 = scalar_lea.hbm %s1086_s2, 16 }
  0x41   : > { %331 = vmatpush.msra.mxu0 %v1342_v7  ;;  %v292_v33 = vadd.f32 %v291_v29, %v286_v21  ;;  %v303_v34 = vmul.f32 %v866_v24, %v302_v32  ;;  %v369_v35 = vand.u32 4294901760, %v368_v25  ;;  %v375_v40 = vand.u32 4294901760, %v374_v26  ;;  %p1088_p1 = scmp.ne.s32.totalorder %s1086_s2, %s1087_s23  ;;  %p1092_p10 = scmp.lt.s32.totalorder %s1086_s2, %s1493_s4 }
  0x42   : > { %358 = vmatpush.msra.mxu1 %v357_v27  ;;  %405 = vmatpush.msra.mxu2 %v1360_v11  ;;  %v500_v36 = vstv %s1381_s10  ;;  %v306_v41 = vstv %s1373_s30  ;;  %s1091_s10 = scalar_lea.hbm %s1493_s4, 32 }
  0x43   : > { %569 = vmatpush.msrb.mxu3 %v357_v27  ;;  %v298_v37 = vadd.f32 %v297_v31, %v292_v33  ;;  %v501_v38 = vmul.f32 %v500_v36, %v283_v12  ;;  %v504_v39 = vstv %s1393_s11  ;;  %454 = vmatpush.msrb.mxu0 %v1367_v13  ;;  %p1089_p4 = pnand %p1088_p1, %p1281_p3  ;;  %p1093_p12 = scmp.lt.s32.totalorder %s1091_s10, %s1087_s23 }
  0x44   : > { %536 = vmatpush.msrb.mxu2 %v1336_v3  ;;  %364 = vmatpush.msra.mxu1 %v363_v28  ;;  %v505_v42 = vmul.f32 %v862_v17, %v504_v39  ;;  %v509_v43 = vstv %s1397_s8 }
  0x45   : > { %575 = vmatpush.msrb.mxu3 %v363_v28  ;;  %v304_v44 = vadd.f32 %v303_v34, %v298_v37  ;;  %v510_v45 = vmul.f32 %v864_v22, %v509_v43  ;;  %v514_v46 = vstv %s1406_s9  ;;  %458 = vmatpush.msrb.mxu0 %v1371_v14  ;;  %p1090_p8 = pneg %p1089_p4  ;;  %p1094_p13 = por %p1093_p12, %p1092_p10 }
  0x46   : > { %538 = vmatpush.msrb.mxu2 %v1338_v4  ;;  %370 = vmatpush.msra.mxu1 %v369_v35  ;;  %v506_v47 = vadd.f32 %v505_v42, %v501_v38  ;;  %v515_v48 = vmul.f32 %v866_v24, %v514_v46  ;;  %v518_v52 = vstv %s1412_s12 }
  0x47   : > { %581 = vmatpush.msrb.mxu3 %v369_v35  ;;  %v307_v49 = vadd.f32 %v306_v41, %v304_v44  ;;  %462 = vmatpush.msrb.mxu0 %v1376_v15  ;;  %p1095_p0 = pnand %p1094_p13, %p1090_p8 }
  0x48   : > { %540 = vmatpush.msrb.mxu2 %v1340_v5  ;;  %376 = vmatpush.msra.mxu1 %v375_v40  ;;  %v511_v50 = vadd.f32 %v510_v45, %v506_v47 }
  0x49   : > { %v310_v51 = vsel %vm308_vm0, %v307_v49, 0  ;;  %587 = vmatpush.msrb.mxu3 %v375_v40  ;;  %466 = vmatpush.msrb.mxu0 %v1384_v18 }
  0x4a   : > { %485 = vmatpush.msrb.mxu1 %v1336_v3  ;;  %542 = vmatpush.msrb.mxu2 %v1342_v7  ;;  %v332_v53 = vand.u32 4294901760, %v310_v51  ;;  %v516_v54 = vadd.f32 %v515_v48, %v511_v50 }
  0x4c   : > { %487 = vmatpush.msrb.mxu1 %v1338_v4  ;;  %v333_v55 = vsub.f32 %v310_v51, %v332_v53  ;;  %v519_v56 = vadd.f32 %v518_v52, %v516_v54 }
  0x4d   : > { %378 = vmatmul.f32.vlgmr.msra.gmra.mxu1 %v332_v53 }
  0x4e   : > { %489 = vmatpush.msrb.mxu1 %v1340_v5  ;;  %408 = vmatmul.f32.vlgmr.msra.gmra.mxu2 %v333_v55  ;;  %v521_v57 = vsel %vm308_vm0, %v519_v56, 0  ;;  %v334_v58 = vand.u32 4294901760, %v333_v55 }
  0x4f   : > { %v543_v59 = vand.u32 4294901760, %v521_v57  ;;  %665 = vmatpush.msra.mxu2 %v1367_v13 }
  0x50   : > { %491 = vmatpush.msrb.mxu1 %v1342_v7  ;;  %435 = vmatmul.f32.vlgmr.msra.gmra.mxu3 %v334_v58  ;;  %v335_v60 = vsub.f32 %v333_v55, %v334_v58 }
  0x51   : > { %v544_v61 = vsub.f32 %v521_v57, %v543_v59  ;;  %669 = vmatpush.msra.mxu2 %v1371_v14  ;;  %696 = vmatpush.msra.mxu3 %v1336_v3 }
  0x52   : > { %636 = vmatpush.msra.mxu1 %v1336_v3  ;;  %v336_v62 = vand.u32 4294901760, %v335_v60 }
  0x53   : > { %v545_v63 = vand.u32 4294901760, %v544_v61  ;;  %673 = vmatpush.msra.mxu2 %v1376_v15  ;;  %698 = vmatpush.msra.mxu3 %v1338_v4 }
  0x54   : > { %638 = vmatpush.msra.mxu1 %v1338_v4  ;;  %337 = vmatmul.f32.vlgmr.msra.gmra.mxu0 %v336_v62 }
  0x55   : > { %493 = vmatmul.f32.vlgmr.msrb.gmra.mxu1 %v332_v53  ;;  %v546_v0 = vsub.f32 %v544_v61, %v545_v63  ;;  %607 = vmatpush.msra.mxu0 %v1347_v8 }
  0x56   : > { %677 = vmatpush.msra.mxu2 %v1384_v18  ;;  %700 = vmatpush.msra.mxu3 %v1340_v5 }
  0x57   : > { %640 = vmatpush.msra.mxu1 %v1340_v5  ;;  %v547_v1 = vand.u32 4294901760, %v546_v0  ;;  %610 = vmatpush.msra.mxu0 %v1350_v9 }
  0x58   : > { %589 = vmatmul.f32.vlgmr.msrb.gmra.mxu3 %v543_v59 }
  0x59   : > { %642 = vmatpush.msra.mxu1 %v1342_v7  ;;  %548 = vmatmul.f32.vlgmr.msrb.gmra.mxu2 %v547_v1 }
  0x5a   : > { %613 = vmatpush.msra.mxu0 %v1355_v10  ;;  %702 = vmatpush.msra.mxu3 %v1342_v7 }
  0x5c   : > { %616 = vmatpush.msra.mxu0 %v1360_v11 }
  0x5d   : > { %468 = vmatmul.f32.vlgmr.msrb.gmra.mxu0 %v332_v53  ;;  %646 = vmatmul.f32.vlgmr.msra.gmra.mxu1 %v545_v63 }
  0x60   : > { %704 = vmatmul.f32.vlgmr.msra.gmra.mxu3 %v543_v59 }
  0x61   : > { %679 = vmatmul.f32.vlgmr.msra.gmra.mxu2 %v543_v59 }
  0x65   : > { %619 = vmatmul.f32.vlgmr.msra.gmra.mxu0 %v544_v61 }
  0xca   : > { %v379_v2 = vpop.f32.mrf.mxu1 }
  0xd1   : > { %v338_v3 = vpop.f32.mrf.mxu0  ;;  %v409_v4 = vpop.f32.mrf.mxu2 }
  0xd2   : > { %v380_v5 = vadd.f32 %v379_v2, %v338_v3  ;;  %v494_v9 = vpop.f32.mrf.mxu1 }
  0xd3   : > { %v436_v6 = vpop.f32.mrf.mxu3 }
  0xd4   : > { %v410_v8 = vadd.f32 %v409_v4, %v380_v5 }
  0xd6   : > { %v437_v12 = vadd.f32 %v436_v6, %v410_v8 }
  0xda   : > { %v469_v10 = vpop.f32.mrf.mxu0  ;;  %v647_v17 = vpop.f32.mrf.mxu1 }
  0xdb   : > { %v470_v13 = vadd.f32 %v469_v10, %v437_v12  ;;  %v590_v11 = vpop.f32.mrf.mxu3 }
  0xdc   : > { %v549_v14 = vpop.f32.mrf.mxu2 }
  0xdd   : > { %v495_v7 = vadd.f32 %v494_v9, %v470_v13  ;;  %v591_v15 = vadd.f32 %v590_v11, %v549_v14 }
  0xdf   : > { %497 = vst [vmem:[%s278_s14] sm:$0xff] %v495_v7 }
  0xe2   : > { %v620_v16 = vpop.f32.mrf.mxu0 }
  0xe3   : > { %v621_v18 = vadd.f32 %v620_v16, %v591_v15  ;;  %v705_v21 = vpop.f32.mrf.mxu3 }
  0xe4   : > { %v680_v20 = vpop.f32.mrf.mxu2 }
  0xe5   : > { %v648_v19 = vadd.f32 %v647_v17, %v621_v18 }
  0xe7   : > { %v681_v22 = vadd.f32 %v680_v20, %v648_v19 }
  0xe9   : > { %v706_v23 = vadd.f32 %v705_v21, %v681_v22 }
  0xeb   : > { %876 = vst [vmem:[%s278_s14 + $0x8] sm:$0xff] %v706_v23 }
  0xec   : > { %1098 = shalt.err (!%p1095_p0)
}
  0xed   : > { %s1172_s27 = smov 128   ;;  %s1173_s9 = smov 8  }
  0xee   : > { %898 = dma.vmem_to_hbm [thread:$0]  (%p1281_p3), %s725_s7, 256, %s727_s0, %s711_s18, %s1172_s27, %s1172_s27, %s1173_s9  }
  0xef PF: > { %s741_s12 = sand.u32 1, %s1145_s15   ;;  %p915_p5 = pnand %p852_p11, %p1248_p6 }
  0xf0   : > { %s742_s13 = scalar_lea.sflag [#allocation4], %s741_s12 }
  0xf1   : > { %p916_p7 = pneg %p915_p5 }
  0xf3   : > { %1140 = dma.done.wait (%p916_p7), %s742_s13, 256  }
  0xf4   : > { %1142 = vsyncadd (%p916_p7), %s742_s13, 4294967040  ;;  %s23_s20 = sadd.s32 1, %s1165_s20   ;;  %s1509_s15 = smov %s1149_s16 }
  0xf5   : > { %p20_p9 = scmp.ge.s32.totalorder %s23_s20, 4   ;;  %s1510_s16 = smov %s1153_s17 }
  0xf6   : > { %s1511_s17 = smov %s1297_s24  ;;  %s1512_s18 = smov %s1161_s19 }
  0xf7   : > { %s1513_s19 = smov %s1515_s28  ;;  %22 = sbr.rel (!%p20_p9) target bundleno = 12 (0xc), region = 99 }
  0xfc   :  { %748 = vsyncpa [#allocation3], 1 }
  0xfd   :  { %750 = vsyncpa [#allocation3 + $0x1], 1 }
  0xfe   :  { %751 = vsyncpa [#allocation7], 1 }
  0xff   :  { %753 = vsyncpa [#allocation7 + $0x1], 1 }
 0x100   :  { %754 = vsyncpa [#allocation4], 1 }
 0x101   :  { %756 = vsyncpa [#allocation4 + $0x1], 1 }
 0x102   :  { %757 = vsyncpa [#allocation5], 1 }
 0x103   :  { %759 = vsyncpa [#allocation5 + $0x1], 1 }
 0x104   :  { %760 = vsyncpa [#allocation10], 1 }

</bundles_post_ra>
